<compile_context>
chip_gen: v7x
topology: tpu7x:2x2x1
jax: 0.10.0
libtpu: 0.0.40
codegen_flags: <defaults>
</compile_context>

<pallas_src>
import functools

import jax
import jax.numpy as jnp
from jax.experimental import pallas as pl
from jax.experimental.pallas import tpu as pltpu

_LANE = 128
_SUBLANE = 8
_BN_EPS = 1e-5


def _rup(n, m):
    return ((n + m - 1) // m) * m


def _pad2d(a, rows, cols):
    r, c = a.shape
    return jnp.pad(a, ((0, rows - r), (0, cols - c)))


def _bn_scale_shift(h, gamma, beta, b_real, b_pad):
    """Training-mode BatchNorm1d as a fused per-feature scale/shift.

    Returns (s, t) with BN(h) == h * s + t.  Single-pass statistics
    (sum and sum-of-squares reduced together); padded batch rows (if any)
    are masked out so they do not bias the statistics.
    """
    if b_real == b_pad:
        hm = h
    else:
        row = jax.lax.broadcasted_iota(jnp.int32, (b_pad, 1), 0)
        hm = jnp.where(row < b_real, h, 0.0)
    inv_n = jnp.float32(1.0 / b_real)
    mean = jnp.sum(hm, axis=0, keepdims=True) * inv_n
    meansq = jnp.sum(hm * hm, axis=0, keepdims=True) * inv_n
    var = jnp.maximum(meansq - mean * mean, 0.0)      # biased variance, clamped
    s = gamma * jax.lax.rsqrt(var + _BN_EPS)
    t = beta - mean * s
    return s, t


def _bn_linear(h, gamma, beta, w_bf16, b, b_real, b_pad):
    """BN (training mode) followed by Linear: (h*s + t) @ W + b, bf16 MXU / f32 acc."""
    s, t = _bn_scale_shift(h, gamma, beta, b_real, b_pad)
    hn = (h * s + t).astype(jnp.bfloat16)             # one fused VPU pass
    return jnp.dot(hn, w_bf16, preferred_element_type=jnp.float32) + b


def mlp4_kernel(
    b_real, b_pad, pdims,                             # static Python ints / tuple
    x_ref, w1_ref, w2_ref, w3_ref, w4_ref, vecs_ref,
    o_ref,
):
    d0, d1, d2, d3, d4 = pdims
    x = x_ref[...]                                    # f32 [b_pad, d0]
    vecs = vecs_ref[...]                              # f32 [16, maxd], one load

    # Static (compile-time) slices of the packed vector table.
    g0, be0 = vecs[0:1, :d0], vecs[1:2, :d0]
    b1, g1, be1 = vecs[2:3, :d1], vecs[3:4, :d1], vecs[4:5, :d1]
    b2, g2, be2 = vecs[5:6, :d2], vecs[6:7, :d2], vecs[7:8, :d2]
    b3 = vecs[8:9, :d3]
    b4 = vecs[9:10, :d4]

    h = jnp.tanh(_bn_linear(x, g0, be0, w1_ref[...], b1, b_real, b_pad))
    h = jnp.tanh(_bn_linear(h, g1, be1, w2_ref[...], b2, b_real, b_pad))
    h = jnp.tanh(_bn_linear(h, g2, be2, w3_ref[...], b3, b_real, b_pad))

    logits = jnp.dot(h.astype(jnp.bfloat16), w4_ref[...],
                     preferred_element_type=jnp.float32) + b4
    o_ref[...] = jax.nn.sigmoid(logits).astype(o_ref.dtype)


def prepare_params(params):
    """One-time preparation: pad weights to lane multiples, cast to bf16, and
    pack all 1-row vectors (gamma/beta/bias) into a single f32 table.
    Returns (prepped_arrays_dict, static_dims_tuple)."""
    d_in = params["w1"].shape[0]
    h1, h2, h3 = params["w1"].shape[1], params["w2"].shape[1], params["w3"].shape[1]
    num_classes = params["w4"].shape[1]
    d0, d1, d2, d3, d4 = (_rup(d_in, _LANE), _rup(h1, _LANE), _rup(h2, _LANE),
                          _rup(h3, _LANE), _rup(num_classes, _LANE))
    maxd = max(d0, d1, d2, d3, d4)

    def pad_w(w, r, c):   # weights -> bf16 (halves VMEM/DMA, full MXU rate on v6e/v7x)
        return _pad2d(w.astype(jnp.float32), r, c).astype(jnp.bfloat16)

    # Pack: g0, be0, b1, g1, be1, b2, g2, be2, b3, b4  (f32; stays f32 for VPU).
    vec_rows = [params["g0"], params["be0"], params["b1"],
                params["g1"], params["be1"], params["b2"],
                params["g2"], params["be2"], params["b3"], params["b4"]]
    n_rows = _rup(len(vec_rows), _SUBLANE)
    vecs = jnp.zeros((n_rows, maxd), jnp.float32)
    for i, v in enumerate(vec_rows):
        vecs = vecs.at[i, : v.shape[1]].set(v[0].astype(jnp.float32))

    prepped = {
        "w1": pad_w(params["w1"], d0, d1),
        "w2": pad_w(params["w2"], d1, d2),
        "w3": pad_w(params["w3"], d2, d3),
        "w4": pad_w(params["w4"], d3, d4),
        "vecs": vecs,
    }
    prepped = jax.tree_util.tree_map(jnp.asarray, prepped)
    dims = (d_in, h1, h2, h3, num_classes, d0, d1, d2, d3, d4)
    return prepped, dims


def mlp4_forward(x, prepped, *, dims):
    """x: [B, input_dim] float32.  prepped/dims from prepare_params().
    Intended to be wrapped in jax.jit (dims bound statically via partial)."""
    d_in, h1, h2, h3, num_classes, d0, d1, d2, d3, d4 = dims
    b_real = x.shape[0]
    b_pad = _rup(b_real, _SUBLANE)

    x_p = _pad2d(x.astype(jnp.float32), b_pad, d0)
    args = (x_p, prepped["w1"], prepped["w2"], prepped["w3"], prepped["w4"],
            prepped["vecs"])

    in_bytes = sum(int(a.size) * a.dtype.itemsize for a in args)
    out_bytes = b_pad * d4 * 4
    act_bytes = 6 * b_pad * max(d0, d1, d2, d3) * 4   # headroom for f32/bf16 temporaries
    # Floor lowered to 4 MiB (real footprint < 1 MiB); cap at 48 MiB so the
    # request is always legal on v7x's 64 MiB physical VMEM per TensorCore.
    vmem_limit = int(min(48 * 1024 * 1024,
                         max(4 * 1024 * 1024,
                             2 * (in_bytes + out_bytes + act_bytes))))

    cost = pl.CostEstimate(
        flops=int(2 * b_real * (d_in * h1 + h1 * h2 + h2 * h3 + h3 * num_classes)),
        transcendentals=int(b_real * (h1 + h2 + h3 + num_classes)),
        bytes_accessed=int(in_bytes + out_bytes),
    )

    vmem_spec = pl.BlockSpec(memory_space=pltpu.MemorySpace.VMEM)
    out_padded = pl.pallas_call(
        functools.partial(mlp4_kernel, b_real, b_pad, (d0, d1, d2, d3, d4)),
        out_shape=jax.ShapeDtypeStruct((b_pad, d4), jnp.float32),
        in_specs=[vmem_spec] * len(args),
        out_specs=vmem_spec,
        compiler_params=pltpu.CompilerParams(vmem_limit_bytes=vmem_limit),
        cost_estimate=cost,
    )(*args)

    # Slice the real rows/columns back out.
    return out_padded[:b_real, :num_classes]


def mlp4_reference(x, params):
    """Pure-JAX reference with the same bf16-MXU / f32-accumulate numerics."""
    def bn(h, g, b):
        mean = jnp.mean(h, axis=0, keepdims=True)
        var = jnp.mean((h - mean) ** 2, axis=0, keepdims=True)
        return (h - mean) * jax.lax.rsqrt(var + _BN_EPS) * g + b

    def dot(a, w):
        return jnp.dot(a.astype(jnp.bfloat16), w.astype(jnp.bfloat16),
                       preferred_element_type=jnp.float32)

    h = jnp.tanh(dot(bn(x, params["g0"], params["be0"]), params["w1"]) + params["b1"])
    h = jnp.tanh(dot(bn(h, params["g1"], params["be1"]), params["w2"]) + params["b2"])
    h = jnp.tanh(dot(bn(h, params["g2"], params["be2"]), params["w3"]) + params["b3"])
    return jax.nn.sigmoid(dot(h, params["w4"]) + params["b4"])


def init_params(key, input_dim, hid_dim=(350, 50, 300), num_classes=1):
    """Deterministic init matching PyTorch shapes (Linear weights transposed)."""
    dims = [input_dim, hid_dim[0], hid_dim[1], hid_dim[2], num_classes]
    keys = jax.random.split(key, 8)
    params = {}
    for i, (din, dout) in enumerate(zip(dims[:-1], dims[1:]), start=1):
        bound = 1.0 / jnp.sqrt(din)
        params[f"w{i}"] = jax.random.uniform(
            keys[2 * (i - 1)], (din, dout), jnp.float32, -bound, bound)
        params[f"b{i}"] = jax.random.uniform(
            keys[2 * (i - 1) + 1], (1, dout), jnp.float32, -bound, bound)
    # BatchNorm affine params: gamma=1, beta=0 (PyTorch default init).
    for j, d in enumerate([input_dim, hid_dim[0], hid_dim[1]]):
        params[f"g{j}"] = jnp.ones((1, d), jnp.float32)
        params[f"be{j}"] = jnp.zeros((1, d), jnp.float32)
    return params


if __name__ == "__main__":
    key = jax.random.PRNGKey(0)
    k_x, k_p = jax.random.split(key)

    B, input_dim = 8, 32
    x = jax.random.normal(k_x, (B, input_dim), jnp.float32)
    params = init_params(k_p, input_dim)

    # One-time weight padding / casting / packing, then a jitted forward.
    prepped, dims = prepare_params(params)
    forward = jax.jit(functools.partial(mlp4_forward, dims=dims))

    out = jax.block_until_ready(forward(x, prepped))
    out2 = jax.block_until_ready(forward(x, prepped))   # cached-compile fast path
    ref = jax.block_until_ready(mlp4_reference(x, params))

    assert out.shape == (B, 1)
    assert bool(jnp.all(jnp.isfinite(out)))
    assert bool(jnp.all((out >= 0.0) & (out <= 1.0)))
    assert bool(jnp.allclose(out, out2))
    assert bool(jnp.allclose(out, ref, atol=2.5e-2, rtol=2.5e-2)), (
        f"max abs err {float(jnp.max(jnp.abs(out - ref)))}")
    print("KERNEL_OK")
</pallas_src>

<mosaic_0001>
module attributes {stable_mosaic.version = 11 : i64} {
  func.func @mlp4_kernel(%arg0: memref<8x128xf32, #tpu.memory_space<vmem>>, %arg1: memref<128x384xbf16, #tpu.memory_space<vmem>>, %arg2: memref<384x128xbf16, #tpu.memory_space<vmem>>, %arg3: memref<128x384xbf16, #tpu.memory_space<vmem>>, %arg4: memref<384x128xbf16, #tpu.memory_space<vmem>>, %arg5: memref<16x384xf32, #tpu.memory_space<vmem>>, %arg6: memref<8x128xf32, #tpu.memory_space<vmem>>) attributes {dimension_semantics = [], scalar_prefetch = 0 : i64, scratch_operands = 0 : i64, tpu.core_type = #tpu.core_type<tc>} {
    %c0 = arith.constant 0 : index
    %c0_0 = arith.constant 0 : index
    %0 = vector.load %arg0[%c0, %c0_0] : memref<8x128xf32, #tpu.memory_space<vmem>>, vector<8x128xf32>
    %c0_1 = arith.constant 0 : index
    %c0_2 = arith.constant 0 : index
    %1 = vector.load %arg5[%c0_1, %c0_2] : memref<16x384xf32, #tpu.memory_space<vmem>>, vector<16x384xf32>
    %2 = vector.extract_strided_slice %1 {offsets = [0, 0], sizes = [1, 128], strides = [1, 1]} : vector<16x384xf32> to vector<1x128xf32>
    %3 = vector.extract_strided_slice %1 {offsets = [1, 0], sizes = [1, 128], strides = [1, 1]} : vector<16x384xf32> to vector<1x128xf32>
    %4 = vector.extract_strided_slice %1 {offsets = [2, 0], sizes = [1, 384], strides = [1, 1]} : vector<16x384xf32> to vector<1x384xf32>
    %5 = vector.extract_strided_slice %1 {offsets = [3, 0], sizes = [1, 384], strides = [1, 1]} : vector<16x384xf32> to vector<1x384xf32>
    %6 = vector.extract_strided_slice %1 {offsets = [4, 0], sizes = [1, 384], strides = [1, 1]} : vector<16x384xf32> to vector<1x384xf32>
    %7 = vector.extract_strided_slice %1 {offsets = [5, 0], sizes = [1, 128], strides = [1, 1]} : vector<16x384xf32> to vector<1x128xf32>
    %8 = vector.extract_strided_slice %1 {offsets = [6, 0], sizes = [1, 128], strides = [1, 1]} : vector<16x384xf32> to vector<1x128xf32>
    %9 = vector.extract_strided_slice %1 {offsets = [7, 0], sizes = [1, 128], strides = [1, 1]} : vector<16x384xf32> to vector<1x128xf32>
    %10 = vector.extract_strided_slice %1 {offsets = [8, 0], sizes = [1, 384], strides = [1, 1]} : vector<16x384xf32> to vector<1x384xf32>
    %11 = vector.extract_strided_slice %1 {offsets = [9, 0], sizes = [1, 128], strides = [1, 1]} : vector<16x384xf32> to vector<1x128xf32>
    %c0_3 = arith.constant 0 : index
    %c0_4 = arith.constant 0 : index
    %12 = vector.load %arg1[%c0_3, %c0_4] : memref<128x384xbf16, #tpu.memory_space<vmem>>, vector<128x384xbf16>
    %cst = arith.constant dense<0.000000e+00> : vector<128xf32>
    %13 = vector.multi_reduction <add>, %0, %cst [0] : vector<8x128xf32> to vector<128xf32>
    %14 = vector.shape_cast %13 : vector<128xf32> to vector<1x128xf32>
    %cst_5 = arith.constant 1.250000e-01 : f32
    %15 = vector.broadcast %cst_5 : f32 to vector<1x128xf32>
    %16 = arith.mulf %14, %15 : vector<1x128xf32>
    %17 = arith.mulf %0, %0 : vector<8x128xf32>
    %cst_6 = arith.constant dense<0.000000e+00> : vector<128xf32>
    %18 = vector.multi_reduction <add>, %17, %cst_6 [0] : vector<8x128xf32> to vector<128xf32>
    %19 = vector.shape_cast %18 : vector<128xf32> to vector<1x128xf32>
    %cst_7 = arith.constant 1.250000e-01 : f32
    %20 = vector.broadcast %cst_7 : f32 to vector<1x128xf32>
    %21 = arith.mulf %19, %20 : vector<1x128xf32>
    %22 = arith.mulf %16, %16 : vector<1x128xf32>
    %23 = arith.subf %21, %22 : vector<1x128xf32>
    %cst_8 = arith.constant 0.000000e+00 : f32
    %24 = vector.broadcast %cst_8 : f32 to vector<1x128xf32>
    %25 = arith.maximumf %23, %24 : vector<1x128xf32>
    %cst_9 = arith.constant 9.99999974E-6 : f32
    %26 = vector.broadcast %cst_9 : f32 to vector<1x128xf32>
    %27 = arith.addf %25, %26 : vector<1x128xf32>
    %28 = math.rsqrt %27 : vector<1x128xf32>
    %29 = arith.mulf %2, %28 : vector<1x128xf32>
    %30 = arith.mulf %16, %29 : vector<1x128xf32>
    %31 = arith.subf %3, %30 : vector<1x128xf32>
    %32 = vector.broadcast %29 : vector<1x128xf32> to vector<8x128xf32>
    %33 = arith.mulf %0, %32 : vector<8x128xf32>
    %34 = vector.broadcast %31 : vector<1x128xf32> to vector<8x128xf32>
    %35 = arith.addf %33, %34 : vector<8x128xf32>
    %36 = arith.truncf %35 : vector<8x128xf32> to vector<8x128xbf16>
    %cst_10 = arith.constant dense<0.000000e+00> : vector<8x384xf32>
    %37 = tpu.matmul %36, %12, %cst_10 {dimension_numbers = #tpu.dot_dimension_numbers<[1], [0], [0], [1], [0, 0, 1, 1], [], []>} : vector<8x128xbf16>, vector<128x384xbf16>, vector<8x384xf32> -> vector<8x384xf32>
    %38 = vector.broadcast %4 : vector<1x384xf32> to vector<8x384xf32>
    %39 = arith.addf %37, %38 : vector<8x384xf32>
    %40 = math.tanh %39 : vector<8x384xf32>
    %c0_11 = arith.constant 0 : index
    %c0_12 = arith.constant 0 : index
    %41 = vector.load %arg2[%c0_11, %c0_12] : memref<384x128xbf16, #tpu.memory_space<vmem>>, vector<384x128xbf16>
    %cst_13 = arith.constant dense<0.000000e+00> : vector<384xf32>
    %42 = vector.multi_reduction <add>, %40, %cst_13 [0] : vector<8x384xf32> to vector<384xf32>
    %43 = vector.shape_cast %42 : vector<384xf32> to vector<1x384xf32>
    %cst_14 = arith.constant 1.250000e-01 : f32
    %44 = vector.broadcast %cst_14 : f32 to vector<1x384xf32>
    %45 = arith.mulf %43, %44 : vector<1x384xf32>
    %46 = arith.mulf %40, %40 : vector<8x384xf32>
    %cst_15 = arith.constant dense<0.000000e+00> : vector<384xf32>
    %47 = vector.multi_reduction <add>, %46, %cst_15 [0] : vector<8x384xf32> to vector<384xf32>
    %48 = vector.shape_cast %47 : vector<384xf32> to vector<1x384xf32>
    %cst_16 = arith.constant 1.250000e-01 : f32
    %49 = vector.broadcast %cst_16 : f32 to vector<1x384xf32>
    %50 = arith.mulf %48, %49 : vector<1x384xf32>
    %51 = arith.mulf %45, %45 : vector<1x384xf32>
    %52 = arith.subf %50, %51 : vector<1x384xf32>
    %cst_17 = arith.constant 0.000000e+00 : f32
    %53 = vector.broadcast %cst_17 : f32 to vector<1x384xf32>
    %54 = arith.maximumf %52, %53 : vector<1x384xf32>
    %cst_18 = arith.constant 9.99999974E-6 : f32
    %55 = vector.broadcast %cst_18 : f32 to vector<1x384xf32>
    %56 = arith.addf %54, %55 : vector<1x384xf32>
    %57 = math.rsqrt %56 : vector<1x384xf32>
    %58 = arith.mulf %5, %57 : vector<1x384xf32>
    %59 = arith.mulf %45, %58 : vector<1x384xf32>
    %60 = arith.subf %6, %59 : vector<1x384xf32>
    %61 = vector.broadcast %58 : vector<1x384xf32> to vector<8x384xf32>
    %62 = arith.mulf %40, %61 : vector<8x384xf32>
    %63 = vector.broadcast %60 : vector<1x384xf32> to vector<8x384xf32>
    %64 = arith.addf %62, %63 : vector<8x384xf32>
    %65 = arith.truncf %64 : vector<8x384xf32> to vector<8x384xbf16>
    %cst_19 = arith.constant dense<0.000000e+00> : vector<8x128xf32>
    %66 = tpu.matmul %65, %41, %cst_19 {dimension_numbers = #tpu.dot_dimension_numbers<[1], [0], [0], [1], [0, 0, 1, 1], [], []>} : vector<8x384xbf16>, vector<384x128xbf16>, vector<8x128xf32> -> vector<8x128xf32>
    %67 = vector.broadcast %7 : vector<1x128xf32> to vector<8x128xf32>
    %68 = arith.addf %66, %67 : vector<8x128xf32>
    %69 = math.tanh %68 : vector<8x128xf32>
    %c0_20 = arith.constant 0 : index
    %c0_21 = arith.constant 0 : index
    %70 = vector.load %arg3[%c0_20, %c0_21] : memref<128x384xbf16, #tpu.memory_space<vmem>>, vector<128x384xbf16>
    %cst_22 = arith.constant dense<0.000000e+00> : vector<128xf32>
    %71 = vector.multi_reduction <add>, %69, %cst_22 [0] : vector<8x128xf32> to vector<128xf32>
    %72 = vector.shape_cast %71 : vector<128xf32> to vector<1x128xf32>
    %cst_23 = arith.constant 1.250000e-01 : f32
    %73 = vector.broadcast %cst_23 : f32 to vector<1x128xf32>
    %74 = arith.mulf %72, %73 : vector<1x128xf32>
    %75 = arith.mulf %69, %69 : vector<8x128xf32>
    %cst_24 = arith.constant dense<0.000000e+00> : vector<128xf32>
    %76 = vector.multi_reduction <add>, %75, %cst_24 [0] : vector<8x128xf32> to vector<128xf32>
    %77 = vector.shape_cast %76 : vector<128xf32> to vector<1x128xf32>
    %cst_25 = arith.constant 1.250000e-01 : f32
    %78 = vector.broadcast %cst_25 : f32 to vector<1x128xf32>
    %79 = arith.mulf %77, %78 : vector<1x128xf32>
    %80 = arith.mulf %74, %74 : vector<1x128xf32>
    %81 = arith.subf %79, %80 : vector<1x128xf32>
    %cst_26 = arith.constant 0.000000e+00 : f32
    %82 = vector.broadcast %cst_26 : f32 to vector<1x128xf32>
    %83 = arith.maximumf %81, %82 : vector<1x128xf32>
    %cst_27 = arith.constant 9.99999974E-6 : f32
    %84 = vector.broadcast %cst_27 : f32 to vector<1x128xf32>
    %85 = arith.addf %83, %84 : vector<1x128xf32>
    %86 = math.rsqrt %85 : vector<1x128xf32>
    %87 = arith.mulf %8, %86 : vector<1x128xf32>
    %88 = arith.mulf %74, %87 : vector<1x128xf32>
    %89 = arith.subf %9, %88 : vector<1x128xf32>
    %90 = vector.broadcast %87 : vector<1x128xf32> to vector<8x128xf32>
    %91 = arith.mulf %69, %90 : vector<8x128xf32>
    %92 = vector.broadcast %89 : vector<1x128xf32> to vector<8x128xf32>
    %93 = arith.addf %91, %92 : vector<8x128xf32>
    %94 = arith.truncf %93 : vector<8x128xf32> to vector<8x128xbf16>
    %cst_28 = arith.constant dense<0.000000e+00> : vector<8x384xf32>
    %95 = tpu.matmul %94, %70, %cst_28 {dimension_numbers = #tpu.dot_dimension_numbers<[1], [0], [0], [1], [0, 0, 1, 1], [], []>} : vector<8x128xbf16>, vector<128x384xbf16>, vector<8x384xf32> -> vector<8x384xf32>
    %96 = vector.broadcast %10 : vector<1x384xf32> to vector<8x384xf32>
    %97 = arith.addf %95, %96 : vector<8x384xf32>
    %98 = math.tanh %97 : vector<8x384xf32>
    %99 = arith.truncf %98 : vector<8x384xf32> to vector<8x384xbf16>
    %c0_29 = arith.constant 0 : index
    %c0_30 = arith.constant 0 : index
    %100 = vector.load %arg4[%c0_29, %c0_30] : memref<384x128xbf16, #tpu.memory_space<vmem>>, vector<384x128xbf16>
    %cst_31 = arith.constant dense<0.000000e+00> : vector<8x128xf32>
    %101 = tpu.matmul %99, %100, %cst_31 {dimension_numbers = #tpu.dot_dimension_numbers<[1], [0], [0], [1], [0, 0, 1, 1], [], []>} : vector<8x384xbf16>, vector<384x128xbf16>, vector<8x128xf32> -> vector<8x128xf32>
    %102 = vector.broadcast %11 : vector<1x128xf32> to vector<8x128xf32>
    %103 = arith.addf %101, %102 : vector<8x128xf32>
    %104 = arith.negf %103 : vector<8x128xf32>
    %105 = math.exp %104 : vector<8x128xf32>
    %cst_32 = arith.constant 1.000000e+00 : f32
    %106 = vector.broadcast %cst_32 : f32 to vector<8x128xf32>
    %107 = arith.addf %106, %105 : vector<8x128xf32>
    %108 = arith.divf %106, %107 : vector<8x128xf32>
    %c0_33 = arith.constant 0 : index
    %c0_34 = arith.constant 0 : index
    %109 = vector.load %arg6[%c0_33, %c0_34] : memref<8x128xf32, #tpu.memory_space<vmem>>, vector<8x128xf32>
    tpu.vector_store %arg6[%c0_33, %c0_34], %108 {strides = array<i32>} : memref<8x128xf32, #tpu.memory_space<vmem>>, vector<8x128xf32>,
    return
  }
}

</mosaic_0001>

<bundles_post_ra>
// kernel: mlp4_forward.1
= control target key start
LH: loop header
LB: loop body
LE: loop exit
PB: predicated region body
PF: predicated region fallthrough
CT: control target
= control target key end

     0   :  { %11 = vsyncpa [#allocation3], 0  ;;  %s2111_s0 = inlined_call_operand.vmem [shape: f32[8,128], index: 0, kind: input, shape index: {}]   ;;  %s2112_s1 = inlined_call_operand.hbm [shape: bf16[128,384], index: 1, kind: input, shape index: {}]   ;;  %s2113_s2 = inlined_call_operand.hbm [shape: bf16[384,128], index: 2, kind: input, shape index: {}]   ;;  %s2114_s3 = inlined_call_operand.hbm [shape: bf16[128,384], index: 3, kind: input, shape index: {}]   ;;  %s2115_s4 = inlined_call_operand.hbm [shape: bf16[384,128], index: 4, kind: input, shape index: {}]   ;;  %s2116_s5 = inlined_call_operand.hbm [shape: f32[16,384], index: 5, kind: input, shape index: {}]   ;;  %s2117_s6 = inlined_call_operand.vmem [shape: f32[8,128], index: 6, kind: output, shape index: {}]  }
   0x1   :  { %12 = vsyncpa [#allocation5], 0 }
   0x2   :  { %13 = vsyncpa [#allocation8], 0  ;;  %s1893_s21 = smov [#allocation4]   ;;  %s1777_s25 = scalar_lea.hbm %s2113_s2, 3072 }
   0x3   :  { %s33_s22 = sshll.u32 %s1893_s21, 4  ;;  %p1778_p0 = scmp.ne.s32.totalorder %s2113_s2, %s1777_s25  ;;  %s34_s22 = int_to_ptr.vmem [resolvable:$true] %s33_s22 }
   0x4   :  { %p1781_p1 = scmp.lt.u32.totalorder %s1777_s25, %s2113_s2 }
   0x6   :  { %p1783_p2 = pnand %p1781_p1, %p1778_p0 }
   0x8   :  { %1786 = shalt.err (!%p1783_p2)
}
   0x9   :  { %s1787_s30 = scalar_lea.vmem %s34_s22, 3072  ;;  %p1792_p4 = scmp.lt.s32.totalorder %s34_s22, %s34_s22 }
   0xa   :  { %p1788_p3 = scmp.ne.s32.totalorder %s34_s22, %s1787_s30  ;;  %p1793_p5 = scmp.lt.s32.totalorder %s1787_s30, %s1787_s30 }
   0xc   :  { %p1794_p6 = por %p1793_p5, %p1792_p4 }
   0xe   :  { %p1795_p7 = pnand %p1794_p6, %p1788_p3 }
  0x10   :  { %1798 = shalt.err (!%p1795_p7)
}
  0x11   :  { %s1894_s7 = smov 64   ;;  %s1895_s8 = smov 4  }
  0x12   :  { %39 = dma.hbm_to_vmem [thread:$0]  %s2113_s2, 3072, %s34_s22, [#allocation5], %s1894_s7, %s1894_s7, %s1895_s8  }
  0x13   :  { %s1896_s11 = smov [#allocation7]   ;;  %s1897_s13 = smov [#allocation2]  }
  0x14   :  { %s57_s12 = sshll.u32 %s1896_s11, 4  ;;  %s21_s14 = sshll.u32 %s1897_s13, 4  ;;  %s58_s12 = int_to_ptr.vmem [resolvable:$true] %s57_s12  ;;  %s22_s14 = int_to_ptr.vmem [resolvable:$true] %s21_s14 }
  0x15   :  { %s1799_s17 = scalar_lea.hbm %s2115_s4, 3072 }
  0x16   :  { %p1800_p8 = scmp.ne.s32.totalorder %s2115_s4, %s1799_s17  ;;  %p1803_p9 = scmp.lt.u32.totalorder %s1799_s17, %s2115_s4 }
  0x18   :  { %p1805_p10 = pnand %p1803_p9, %p1800_p8 }
  0x1a   :  { %1808 = shalt.err (!%p1805_p10)
}
  0x1b   :  { %s1809_s2 = scalar_lea.vmem %s58_s12, 3072  ;;  %p1814_p12 = scmp.lt.s32.totalorder %s58_s12, %s58_s12 }
  0x1c   :  { %p1810_p11 = scmp.ne.s32.totalorder %s58_s12, %s1809_s2  ;;  %p1815_p13 = scmp.lt.s32.totalorder %s1809_s2, %s1809_s2 }
  0x1e   :  { %p1816_p0 = por %p1815_p13, %p1814_p12 }
  0x20   :  { %p1817_p1 = pnand %p1816_p0, %p1810_p11 }
  0x22   :  { %1820 = shalt.err (!%p1817_p1)
}
  0x23   :  { %63 = dma.hbm_to_vmem [thread:$0]  %s2115_s4, 3072, %s58_s12, [#allocation8], %s1894_s7, %s1894_s7, %s1895_s8  }
  0x24   :  { %s1821_s26 = scalar_lea.hbm %s2112_s1, 3072 }
  0x25   :  { %p1822_p2 = scmp.ne.s32.totalorder %s2112_s1, %s1821_s26  ;;  %p1825_p3 = scmp.lt.u32.totalorder %s1821_s26, %s2112_s1 }
  0x27   :  { %p1827_p4 = pnand %p1825_p3, %p1822_p2 }
  0x29   :  { %1830 = shalt.err (!%p1827_p4)
}
  0x2a   :  { %s1831_s9 = scalar_lea.vmem %s22_s14, 3072  ;;  %p1836_p6 = scmp.lt.s32.totalorder %s22_s14, %s22_s14 }
  0x2b   :  { %p1832_p5 = scmp.ne.s32.totalorder %s22_s14, %s1831_s9  ;;  %p1837_p7 = scmp.lt.s32.totalorder %s1831_s9, %s1831_s9 }
  0x2d   :  { %p1838_p8 = por %p1837_p7, %p1836_p6 }
  0x2f   :  { %p1839_p9 = pnand %p1838_p8, %p1832_p5 }
  0x31   :  { %1842 = shalt.err (!%p1839_p9)
}
  0x32   :  { %s1898_s4 = smov 192   ;;  %s1899_s7 = smov 12  }
  0x33   :  { %27 = dma.hbm_to_vmem [thread:$0]  %s2112_s1, 3072, %s22_s14, [#allocation3], %s1898_s4, %s1898_s4, %s1899_s7  }
  0x34   :  { %s1900_s11 = smov [#allocation6]   ;;  %s1901_s13 = smov [#allocation9]  }
  0x35   :  { %s45_s12 = sshll.u32 %s1900_s11, 4  ;;  %s69_s15 = sshll.u32 %s1901_s13, 4  ;;  %s46_s12 = int_to_ptr.vmem [resolvable:$true] %s45_s12  ;;  %s70_s15 = int_to_ptr.vmem [resolvable:$true] %s69_s15 }
  0x36   :  { %s1843_s18 = scalar_lea.hbm %s2114_s3, 3072 }
  0x37   :  { %p1844_p10 = scmp.ne.s32.totalorder %s2114_s3, %s1843_s18  ;;  %p1847_p11 = scmp.lt.u32.totalorder %s1843_s18, %s2114_s3 }
  0x39   :  { %p1849_p12 = pnand %p1847_p11, %p1844_p10 }
  0x3b   :  { %1852 = shalt.err (!%p1849_p12)
}
  0x3c   :  { %s1853_s1 = scalar_lea.vmem %s46_s12, 3072  ;;  %p1858_p0 = scmp.lt.s32.totalorder %s46_s12, %s46_s12 }
  0x3d   :  { %p1854_p13 = scmp.ne.s32.totalorder %s46_s12, %s1853_s1  ;;  %p1859_p1 = scmp.lt.s32.totalorder %s1853_s1, %s1853_s1 }
  0x3f   :  { %p1860_p2 = por %p1859_p1, %p1858_p0 }
  0x41   :  { %p1861_p3 = pnand %p1860_p2, %p1854_p13 }
  0x43   :  { %1864 = shalt.err (!%p1861_p3)
}
  0x44   :  { %51 = dma.hbm_to_vmem [thread:$0]  %s2114_s3, 3072, %s46_s12, [#allocation5], %s1898_s4, %s1898_s4, %s1899_s7  }
  0x45   :  { %s1865_s25 = scalar_lea.hbm %s2116_s5, 768 }
  0x46   :  { %p1866_p4 = scmp.ne.s32.totalorder %s2116_s5, %s1865_s25  ;;  %p1869_p5 = scmp.lt.u32.totalorder %s1865_s25, %s2116_s5 }
  0x48   :  { %p1871_p6 = pnand %p1869_p5, %p1866_p4 }
  0x4a   :  { %1874 = shalt.err (!%p1871_p6)
}
  0x4b   :  { %s1875_s30 = scalar_lea.vmem %s70_s15, 768  ;;  %p1880_p8 = scmp.lt.s32.totalorder %s70_s15, %s70_s15 }
  0x4c   :  { %p1876_p7 = scmp.ne.s32.totalorder %s70_s15, %s1875_s30  ;;  %p1881_p9 = scmp.lt.s32.totalorder %s1875_s30, %s1875_s30 }
  0x4e   :  { %p1882_p10 = por %p1881_p9, %p1880_p8 }
  0x50   :  { %p1883_p11 = pnand %p1882_p10, %p1876_p7 }
  0x52   :  { %1886 = shalt.err (!%p1883_p11)
}
  0x53   :  { %s1902_s3 = smov 384   ;;  %s1903_s9 = smov 24  }
  0x54   :  { %75 = dma.hbm_to_vmem [thread:$0]  %s2116_s5, 768, %s70_s15, [#allocation8], %s1902_s3, %s1902_s3, %s1903_s9  }
  0x55   :  { %1887 = dma.done.wait [#allocation3], 3072  }
  0x56   :  { %1888 = vsyncadd [#allocation3], 4294964224 }
  0x57   :  { %1889 = dma.done.wait [#allocation5], 6144  }
  0x58   :  { %1890 = vsyncadd [#allocation5], 4294961152 }
  0x59   :  { %1891 = dma.done.wait [#allocation8], 3840  }
  0x5a   :  { %1892 = vsyncadd [#allocation8], 4294963456  ;;  %v1904_v0 = vmov 0.0   ;;  %v1905_v1 = vmov 0   ;;  %vm1906_vm0 = vmmov 0   ;;  %v92_v21 = vld [vmem:[%s2111_s0] sm:$0xff]  ;;  %v157_v45 = vlaneseq }
  0x5b   :  { %1543 = vmatprep.subr.bf16.mxu1 %v1904_v0  ;;  %340 = vmatprep.mubr.bf16.mxu0 %v1905_v1  ;;  %v1637_v2 = vld [vmem:[#allocation2 + $0x4] ss:$12 sps:$4 sm:$0xff]   ;;  %v1639_v3 = vld [vmem:[#allocation2] ss:$12 sps:$4 sm:$0xff]   ;;  %v1640_v4 = vld [vmem:[#allocation2 + $0x8] ss:$12 sps:$4 sm:$0xff]   ;;  %v138_v23 = vmul.f32 %v92_v21, %v92_v21 }
  0x5c   :  { %1559 = vmatprep.mubr.msk.bf16.mxu1 %vm1906_vm0, %v1904_v0  ;;  %308 = vmatprep.subr.bf16.mxu0 %v1637_v2  ;;  %v1641_v5 = vld [vmem:[#allocation2 + $0x1c] ss:$12 sps:$4 sm:$0xff]   ;;  %v1643_v6 = vld [vmem:[#allocation2 + $0x18] ss:$12 sps:$4 sm:$0xff]   ;;  %v1644_v7 = vld [vmem:[#allocation2 + $0x20] ss:$12 sps:$4 sm:$0xff]  }
  0x5d   :  { %309 = vmatpush1.bf16.msra.mxu0 %v1639_v3  ;;  %1544 = vmatpush3.bf16.msra.mxu1 %v1640_v4  ;;  %v1645_v8 = vld [vmem:[#allocation2 + $0x34] ss:$12 sps:$4 sm:$0xff]   ;;  %v1647_v9 = vld [vmem:[#allocation2 + $0x30] ss:$12 sps:$4 sm:$0xff]   ;;  %v1648_v10 = vld [vmem:[#allocation2 + $0x38] ss:$12 sps:$4 sm:$0xff]  }
  0x5e   :  { %310 = vmatprep.subr.bf16.mxu0 %v1641_v5  ;;  %1545 = vmatprep.subr.bf16.mxu1 %v1904_v0  ;;  %v1649_v11 = vld [vmem:[#allocation2 + $0x4c] ss:$12 sps:$4 sm:$0xff]   ;;  %v1651_v12 = vld [vmem:[#allocation2 + $0x48] ss:$12 sps:$4 sm:$0xff]   ;;  %v1652_v13 = vld [vmem:[#allocation2 + $0x50] ss:$12 sps:$4 sm:$0xff]  }
  0x5f   :  { %v1653_v14 = vld [vmem:[#allocation2 + $0x64] ss:$12 sps:$4 sm:$0xff]   ;;  %v1655_v15 = vld [vmem:[#allocation2 + $0x60] ss:$12 sps:$4 sm:$0xff]   ;;  %v1656_v16 = vld [vmem:[#allocation2 + $0x68] ss:$12 sps:$4 sm:$0xff]  }
  0x60   :  { %v1657_v17 = vld [vmem:[#allocation2 + $0x7c] ss:$12 sps:$4 sm:$0xff]   ;;  %v1659_v18 = vld [vmem:[#allocation2 + $0x78] ss:$12 sps:$4 sm:$0xff]   ;;  %v1660_v19 = vld [vmem:[#allocation2 + $0x80] ss:$12 sps:$4 sm:$0xff]  }
  0x61   :  { %311 = vmatpush1.bf16.msra.mxu0 %v1643_v6  ;;  %1546 = vmatpush3.bf16.msra.mxu1 %v1644_v7  ;;  %v1661_v20 = vld [vmem:[#allocation2 + $0x94] ss:$12 sps:$4 sm:$0xff]   ;;  %v131_v22 = vrot.slane %v92_v21, 4  ;;  %v1663_v24 = vld [vmem:[#allocation2 + $0x90] ss:$12 sps:$4 sm:$0xff]   ;;  %v139_v26 = vrot.slane %v138_v23, 4 }
  0x62   :  { %312 = vmatprep.subr.bf16.mxu0 %v1645_v8  ;;  %1547 = vmatprep.subr.bf16.mxu1 %v1904_v0  ;;  %v1664_v27 = vld [vmem:[#allocation2 + $0x98] ss:$12 sps:$4 sm:$0xff]   ;;  %v1667_v31 = vld [vmem:[#allocation2 + $0xa8] ss:$12 sps:$4 sm:$0xff]   ;;  %v1668_v34 = vld [vmem:[#allocation2 + $0xb0] ss:$12 sps:$4 sm:$0xff]  }
  0x63   :  { %v132_v25 = vadd.f32 %v131_v22, %v92_v21  ;;  %v1665_v28 = vld [vmem:[#allocation2 + $0xac] ss:$12 sps:$4 sm:$0xff]   ;;  %v140_v30 = vadd.f32 %v139_v26, %v138_v23  ;;  %v2017_v47 = vshrl.u32 %v157_v45, 7  ;;  %v2022_v49 = vld [vmem:[#allocation9] sm:$0xff]  ;;  %v1675_v5 = vld [vmem:[#allocation4 + $0x90] sm:$0xff]  }
  0x64   :  { %v1669_v61 = vld [vmem:[#allocation4 + $0x80] sm:$0xff]   ;;  %v1672_v2 = vld [vmem:[#allocation4 + $0x88] sm:$0xff]   ;;  %v1676_v6 = vld [vmem:[#allocation4 + $0x50] sm:$0xff]  }
  0x65   :  { %313 = vmatpush1.bf16.msra.mxu0 %v1647_v9  ;;  %1548 = vmatpush3.bf16.msra.mxu1 %v1648_v10  ;;  %v133_v29 = vrot.slane %v132_v25, 2  ;;  %v141_v33 = vrot.slane %v140_v30, 2  ;;  %v2020_v48 = vsub.s32 0, %v2017_v47  ;;  %v164_v55 = vsub.s32 1, %v2017_v47  ;;  %v1670_v62 = vld [vmem:[#allocation4 + $0x40] sm:$0xff]   ;;  %v1673_v3 = vld [vmem:[#allocation4 + $0x48] sm:$0xff]  }
  0x66   :  { %314 = vmatprep.subr.bf16.mxu0 %v1649_v11  ;;  %1549 = vmatprep.subr.bf16.mxu1 %v1904_v0  ;;  %v1671_v63 = vld [vmem:[#allocation4] sm:$0xff]   ;;  %v1674_v4 = vld [vmem:[#allocation4 + $0x8] sm:$0xff]   ;;  %v1677_v7 = vld [vmem:[#allocation4 + $0x10] sm:$0xff]   ;;  %v170_v23 = vsub.s32 2, %v2017_v47 }
  0x67   :  { %v134_v32 = vadd.f32 %v133_v29, %v132_v25  ;;  %v142_v36 = vadd.f32 %v141_v33, %v140_v30  ;;  %v1678_v8 = vld [vmem:[#allocation4 + $0x98] sm:$0xff]   ;;  %v1681_v11 = vld [vmem:[#allocation4 + $0xa0] sm:$0xff]   ;;  %v2043_v25 = vld [vmem:[#allocation9 + $0x8] sm:$0xff] }
  0x68   :  { %v1679_v9 = vld [vmem:[#allocation4 + $0x58] sm:$0xff]   ;;  %v171_v26 = vrot.slane %v2022_v49, %v170_v23 }
  0x69   :  { %315 = vmatpush1.bf16.msra.mxu0 %v1651_v12  ;;  %1550 = vmatpush3.bf16.msra.mxu1 %v1652_v13  ;;  %v135_v35 = vrot.slane %v134_v32, 1  ;;  %v143_v38 = vrot.slane %v142_v36, 1  ;;  %v1680_v10 = vld [vmem:[#allocation4 + $0x18] sm:$0xff]   ;;  %v1682_v12 = vld [vmem:[#allocation4 + $0x60] sm:$0xff]  }
  0x6a   :  { %316 = vmatprep.subr.bf16.mxu0 %v1653_v14  ;;  %1551 = vmatprep.subr.bf16.mxu1 %v1904_v0  ;;  %v1683_v13 = vld [vmem:[#allocation4 + $0x20] sm:$0xff]   ;;  %v1684_v14 = vld [vmem:[#allocation4 + $0xa8] sm:$0xff]   ;;  %v1692_v22 = vld [vmem:[#allocation4 + $0x38] sm:$0xff]  }
  0x6b   :  { %v136_v37 = vadd.f32 %v135_v35, %v134_v32  ;;  %v144_v40 = vadd.f32 %v143_v38, %v142_v36 }
  0x6d   :  { %317 = vmatpush1.bf16.msra.mxu0 %v1655_v15  ;;  %1552 = vmatpush3.bf16.msra.mxu1 %v1656_v16  ;;  %v137_v39 = vmul.f32 0.125, %v136_v37  ;;  %v145_v41 = vmul.f32 0.125, %v144_v40  ;;  %v1685_v15 = vld [vmem:[#allocation4 + $0x68] sm:$0xff]  }
  0x6e   :  { %318 = vmatprep.subr.bf16.mxu0 %v1657_v17  ;;  %1553 = vmatprep.subr.bf16.mxu1 %v1904_v0  ;;  %v1686_v16 = vld [vmem:[#allocation4 + $0x28] sm:$0xff]   ;;  %v1687_v17 = vld [vmem:[#allocation4 + $0xb0] sm:$0xff]  }
  0x6f   :  { %v146_v42 = vmul.f32 %v137_v39, %v137_v39 }
  0x71   :  { %319 = vmatpush1.bf16.msra.mxu0 %v1659_v18  ;;  %1554 = vmatpush3.bf16.msra.mxu1 %v1660_v19  ;;  %v147_v43 = vsub.f32 %v145_v41, %v146_v42  ;;  %v1688_v18 = vld [vmem:[#allocation4 + $0x70] sm:$0xff]  }
  0x72   :  { %320 = vmatprep.subr.bf16.mxu0 %v1661_v20  ;;  %1555 = vmatprep.subr.bf16.mxu1 %v1904_v0  ;;  %v1689_v19 = vld [vmem:[#allocation4 + $0x30] sm:$0xff]   ;;  %v1690_v20 = vld [vmem:[#allocation4 + $0xb8] sm:$0xff]  }
  0x73   :  { %v148_v44 = vmax.f32 %v147_v43, 0.0 }
  0x75   :  { %321 = vmatpush1.bf16.msra.mxu0 %v1663_v24  ;;  %1556 = vmatpush3.bf16.msra.mxu1 %v1664_v27  ;;  %v149_v46 = vadd.f32 1e-05, %v148_v44  ;;  %v2041_v24 = vld [vmem:[#allocation9 + $0x10] sm:$0xff] }
  0x76   :  { %322 = vmatprep.subr.bf16.mxu0 %v1665_v28  ;;  %1557 = vmatprep.subr.bf16.mxu1 %v1904_v0  ;;  %v179_v27 = vrot.slane %v2041_v24, %v170_v23  ;;  %v175_v28 = vrot.slane %v2043_v25, %v170_v23 }
  0x77   :  { %1749 = vrsqrt.f32 %v149_v46 }
  0x79   :  { %323 = vmatpush1.bf16.msra.mxu0 %v1667_v31  ;;  %1558 = vmatpush3.bf16.msra.mxu1 %v1668_v34 }
  0x7a   :  { %1563 = vmatprep.subr.bf16.mxu1 %v1904_v0  ;;  %1472 = vmatprep.subr.bf16.mxu0 %v1670_v62 }
  0x81   :  { %v1750_v50 = vpop.eup %1749 }
  0x82   :  { %v151_v51 = vmul.f32 %v1750_v50, %v2022_v49 }
  0x84   :  { %v152_v52 = vmul.f32 %v151_v51, %v137_v39  ;;  %v160_v53 = vrot.slane %v151_v51, %v2020_v48 }
  0x86   :  { %v154_v54 = vrot.slane %v152_v52, 7  ;;  %v161_v57 = vmul.f32 %v160_v53, %v92_v21  ;;  %v1691_v21 = vld [vmem:[#allocation4 + $0x78] sm:$0xff]  }
  0x88   :  { %v156_v56 = vsub.f32 %v2022_v49, %v154_v54 }
  0x8a   :  { %v165_v58 = vrot.slane %v156_v56, %v164_v55 }
  0x8c   :  { %v166_v59 = vadd.f32 %v165_v58, %v161_v57 }
  0x8e   :  { %v167_v60 = vpack.c.bf16 %v166_v59, %v166_v59 }
  0x90   :  { %341 = vmatmul.mubr.bf16.vlgmr.msra.gmra.mrb[0].mxu0 %v167_v60  ;;  %1560 = vmatmul.mubr.bf16.vlgmr.msra.gmra.mrb[0].mxu1 %v167_v60 }
  0x91   :  { %1579 = vmatprep.mubr.msk.bf16.mxu1 %vm1906_vm0, %v1904_v0  ;;  %1564 = vmatpush3.bf16.msra.mxu1 %v1669_v61 }
  0x92   :  { %1565 = vmatprep.subr.bf16.mxu1 %v1904_v0  ;;  %1473 = vmatpush3.bf16.msra.mxu0 %v1671_v63 }
  0x93   :  { %1474 = vmatprep.subr.bf16.mxu0 %v1673_v3 }
  0x95   :  { %1566 = vmatpush3.bf16.msra.mxu1 %v1672_v2 }
  0x96   :  { %1567 = vmatprep.subr.bf16.mxu1 %v1904_v0  ;;  %1475 = vmatpush3.bf16.msra.mxu0 %v1674_v4 }
  0x97   :  { %1476 = vmatprep.subr.bf16.mxu0 %v1676_v6 }
  0x99   :  { %1568 = vmatpush3.bf16.msra.mxu1 %v1675_v5 }
  0x9a   :  { %1569 = vmatprep.subr.bf16.mxu1 %v1904_v0  ;;  %1477 = vmatpush3.bf16.msra.mxu0 %v1677_v7 }
  0x9b   :  { %1478 = vmatprep.subr.bf16.mxu0 %v1679_v9 }
  0x9d   :  { %1570 = vmatpush3.bf16.msra.mxu1 %v1678_v8 }
  0x9e   :  { %1571 = vmatprep.subr.bf16.mxu1 %v1904_v0  ;;  %1479 = vmatpush3.bf16.msra.mxu0 %v1680_v10 }
  0x9f   :  { %1480 = vmatprep.subr.bf16.mxu0 %v1682_v12 }
  0xa1   :  { %1572 = vmatpush3.bf16.msra.mxu1 %v1681_v11 }
  0xa2   :  { %1573 = vmatprep.subr.bf16.mxu1 %v1904_v0  ;;  %1481 = vmatpush3.bf16.msra.mxu0 %v1683_v13 }
  0xa3   :  { %1482 = vmatprep.subr.bf16.mxu0 %v1685_v15 }
  0xa5   :  { %1574 = vmatpush3.bf16.msra.mxu1 %v1684_v14 }
  0xa6   :  { %1575 = vmatprep.subr.bf16.mxu1 %v1904_v0  ;;  %1483 = vmatpush3.bf16.msra.mxu0 %v1686_v16 }
  0xa7   :  { %1484 = vmatprep.subr.bf16.mxu0 %v1688_v18 }
  0xa9   :  { %1576 = vmatpush3.bf16.msra.mxu1 %v1687_v17 }
  0xaa   :  { %1577 = vmatprep.subr.bf16.mxu1 %v1904_v0  ;;  %1485 = vmatpush3.bf16.msra.mxu0 %v1689_v19 }
  0xab   :  { %1486 = vmatprep.subr.bf16.mxu0 %v1691_v21 }
  0xad   :  { %1578 = vmatpush3.bf16.msra.mxu1 %v1690_v20 }
  0xae   :  { %1583 = vmatprep.subr.bf16.mxu1 %v1904_v0  ;;  %1487 = vmatpush3.bf16.msra.mxu0 %v1692_v22 }
 0x163   :  { %v342_v29 = vpop.f32.mrb[0].mxu0  ;;  %v383_v30 = vpop.f32.mrb[0].mxu1 }
 0x164   :  { %v343_v31 = vadd.f32 %v342_v29, %v171_v26  ;;  %v384_v32 = vadd.f32 %v383_v30, %v179_v27  ;;  %v344_v33 = vpop.f32.mrb[1].mxu0  ;;  %v1561_v34 = vpop.f32.mrb[1].mxu1 }
 0x165   :  { %v345_v35 = vadd.f32 %v344_v33, %v175_v28  ;;  %v346_v36 = vpop.f32.mrb[2].mxu0  ;;  %v386_v37 = vpop.f32.mrb[2].mxu1 }
 0x166   :  { %1751 = vtanh.f32 %v343_v31  ;;  %v347_v38 = vpop.f32.mrb[3].mxu0  ;;  %v1562_v39 = vpop.f32.mrb[3].mxu1 }
 0x167   :  { %1753 = vtanh.f32 %v384_v32 }
 0x168   :  { %1755 = vtanh.f32 %v345_v35 }
 0x170   :  { %v2048_v40 = vpop.eup %1751 }
 0x171   :  { %v2050_v41 = vpop.eup %1753  ;;  %v440_v42 = vrot.slane %v2048_v40, 4  ;;  %v461_v43 = vmul.f32 %v2048_v40, %v2048_v40 }
 0x172   :  { %v2055_v44 = vpop.eup %1755  ;;  %v452_v45 = vrot.slane %v2050_v41, 4  ;;  %v463_v46 = vmul.f32 %v2050_v41, %v2050_v41 }
 0x173   :  { %v446_v50 = vrot.slane %v2055_v44, 4  ;;  %v462_v51 = vmul.f32 %v2055_v44, %v2055_v44  ;;  %v441_v52 = vadd.f32 %v2048_v40, %v440_v42  ;;  %v464_v53 = vrot.slane %v461_v43, 4 }
 0x174   :  { %v453_v54 = vadd.f32 %v2050_v41, %v452_v45  ;;  %v476_v56 = vrot.slane %v463_v46, 4 }
 0x175   :  { %v447_v57 = vadd.f32 %v2055_v44, %v446_v50  ;;  %v470_v58 = vrot.slane %v462_v51, 4  ;;  %v442_v59 = vrot.slane %v441_v52, 2  ;;  %v465_v60 = vadd.f32 %v464_v53, %v461_v43 }
 0x176   :  { %v454_v61 = vrot.slane %v453_v54, 2  ;;  %v477_v62 = vadd.f32 %v476_v56, %v463_v46  ;;  %v520_v56 = vsub.s32 3, %v2017_v47 }
 0x177   :  { %v448_v63 = vrot.slane %v447_v57, 2  ;;  %v471_v2 = vadd.f32 %v470_v58, %v462_v51  ;;  %v443_v3 = vadd.f32 %v442_v59, %v441_v52  ;;  %v466_v4 = vrot.slane %v465_v60, 2 }
 0x178   :  { %v455_v5 = vadd.f32 %v454_v61, %v453_v54  ;;  %v478_v6 = vrot.slane %v477_v62, 2 }
 0x179   :  { %v449_v7 = vadd.f32 %v448_v63, %v447_v57  ;;  %v472_v8 = vrot.slane %v471_v2, 2  ;;  %v444_v9 = vrot.slane %v443_v3, 1  ;;  %v467_v10 = vadd.f32 %v466_v4, %v465_v60 }
 0x17a   :  { %v456_v11 = vrot.slane %v455_v5, 1  ;;  %v479_v12 = vadd.f32 %v478_v6, %v477_v62  ;;  %v535_v60 = vsub.s32 4, %v2017_v47 }
 0x17b   :  { %v450_v13 = vrot.slane %v449_v7, 1  ;;  %v473_v14 = vadd.f32 %v472_v8, %v471_v2  ;;  %v445_v15 = vadd.f32 %v444_v9, %v443_v3  ;;  %v468_v16 = vrot.slane %v467_v10, 1 }
 0x17c   :  { %v457_v17 = vadd.f32 %v456_v11, %v455_v5  ;;  %v480_v18 = vrot.slane %v479_v12, 1 }
 0x17d   :  { %v451_v19 = vadd.f32 %v450_v13, %v449_v7  ;;  %v474_v20 = vrot.slane %v473_v14, 1  ;;  %v458_v21 = vmul.f32 0.125, %v445_v15  ;;  %v469_v22 = vadd.f32 %v468_v16, %v467_v10 }
 0x17e   :  { %v460_v23 = vmul.f32 0.125, %v457_v17  ;;  %v481_v26 = vadd.f32 %v480_v18, %v479_v12 }
 0x17f   :  { %v459_v27 = vmul.f32 0.125, %v451_v19  ;;  %v475_v28 = vadd.f32 %v474_v20, %v473_v14  ;;  %v482_v29 = vmul.f32 0.125, %v469_v22  ;;  %v485_v30 = vmul.f32 %v458_v21, %v458_v21  ;;  %v1703_v22 = vld [vmem:[#allocation6 + $0x34] ss:$12 sps:$4 sm:$0xff]  }
 0x180   :  { %v484_v31 = vmul.f32 0.125, %v481_v26  ;;  %v487_v32 = vmul.f32 %v460_v23, %v460_v23  ;;  %v1701_v26 = vld [vmem:[#allocation6 + $0x30] ss:$12 sps:$4 sm:$0xff]  }
 0x181   :  { %v483_v33 = vmul.f32 0.125, %v475_v28  ;;  %v486_v34 = vmul.f32 %v459_v27, %v459_v27  ;;  %v488_v35 = vsub.f32 %v482_v29, %v485_v30  ;;  %v1705_v28 = vld [vmem:[#allocation6 + $0x48] ss:$12 sps:$4 sm:$0xff]   ;;  %v1711_v29 = vld [vmem:[#allocation6 + $0x64] ss:$12 sps:$4 sm:$0xff]  }
 0x182   :  { %v490_v36 = vsub.f32 %v484_v31, %v487_v32  ;;  %v1712_v30 = vld [vmem:[#allocation6 + $0x68] ss:$12 sps:$4 sm:$0xff]   ;;  %v1709_v31 = vld [vmem:[#allocation6 + $0x60] ss:$12 sps:$4 sm:$0xff]  }
 0x183   :  { %v489_v37 = vsub.f32 %v483_v33, %v486_v34  ;;  %v491_v38 = vmax.f32 %v488_v35, 0.0  ;;  %v1715_v32 = vld [vmem:[#allocation6 + $0x7c] ss:$12 sps:$4 sm:$0xff]   ;;  %v1716_v33 = vld [vmem:[#allocation6 + $0x80] ss:$12 sps:$4 sm:$0xff]  }
 0x184   :  { %v493_v39 = vmax.f32 %v490_v36, 0.0  ;;  %v1713_v34 = vld [vmem:[#allocation6 + $0x78] ss:$12 sps:$4 sm:$0xff]   ;;  %v1719_v35 = vld [vmem:[#allocation6 + $0x94] ss:$12 sps:$4 sm:$0xff]  }
 0x185   :  { %v492_v42 = vmax.f32 %v489_v37, 0.0  ;;  %v494_v43 = vadd.f32 1e-05, %v491_v38  ;;  %v1720_v36 = vld [vmem:[#allocation6 + $0x98] ss:$12 sps:$4 sm:$0xff]  }
 0x186   :  { %v496_v45 = vadd.f32 1e-05, %v493_v39  ;;  %v1717_v37 = vld [vmem:[#allocation6 + $0x90] ss:$12 sps:$4 sm:$0xff]   ;;  %v1723_v38 = vld [vmem:[#allocation6 + $0xac] ss:$12 sps:$4 sm:$0xff]  }
 0x187   :  { %v495_v46 = vadd.f32 1e-05, %v492_v42  ;;  %1757 = vrsqrt.f32 %v494_v43  ;;  %v1724_v39 = vld [vmem:[#allocation6 + $0xb0] ss:$12 sps:$4 sm:$0xff]   ;;  %v1721_v42 = vld [vmem:[#allocation6 + $0xa8] ss:$12 sps:$4 sm:$0xff]  }
 0x188   :  { %1759 = vrsqrt.f32 %v496_v45  ;;  %v1726_v43 = vld [vmem:[#allocation7 + $0x40] sm:$0xff]   ;;  %v553_v45 = vsub.s32 5, %v2017_v47 }
 0x189   :  { %1761 = vrsqrt.f32 %v495_v46 }
 0x191   :  { %v1758_v50 = vpop.eup %1757 }
 0x192   :  { %v1760_v51 = vpop.eup %1759  ;;  %v500_v52 = vmul.f32 %v1758_v50, %v2022_v49 }
 0x193   :  { %v1762_v53 = vpop.eup %1761  ;;  %v502_v54 = vmul.f32 %v1760_v51, %v2041_v24 }
 0x194   :  { %v501_v57 = vmul.f32 %v1762_v53, %v2043_v25  ;;  %v503_v58 = vmul.f32 %v500_v52, %v458_v21  ;;  %v521_v3 = vrot.slane %v500_v52, %v520_v56  ;;  %v1697_v21 = vld [vmem:[#allocation6 + $0x18] ss:$12 sps:$4 sm:$0xff]   ;;  %v554_v53 = vrot.slane %v2022_v49, %v553_v45  ;;  %v1741_v45 = vld [vmem:[#allocation7 + $0x68] sm:$0xff]  }
 0x195   :  { %v505_v59 = vmul.f32 %v502_v54, %v460_v23  ;;  %v529_v2 = vrot.slane %v502_v54, %v520_v56  ;;  %v1704_v23 = vld [vmem:[#allocation6 + $0x38] ss:$12 sps:$4 sm:$0xff]  }
 0x196   :  { %v504_v61 = vmul.f32 %v501_v57, %v459_v27  ;;  %v509_v62 = vrot.slane %v503_v58, 7  ;;  %v525_v5 = vrot.slane %v501_v57, %v520_v56  ;;  %v530_v12 = vmul.f32 %v2048_v40, %v521_v3  ;;  %v1696_v40 = vld [vmem:[#allocation6 + $0x8] ss:$12 sps:$4 sm:$0xff]   ;;  %v1708_v27 = vld [vmem:[#allocation6 + $0x50] ss:$12 sps:$4 sm:$0xff]  }
 0x197   :  { %v511_v63 = vrot.slane %v505_v59, 7  ;;  %v532_v11 = vmul.f32 %v2050_v41, %v529_v2  ;;  %v1699_v41 = vld [vmem:[#allocation6 + $0x1c] ss:$12 sps:$4 sm:$0xff]  }
 0x198   :  { %v510_v4 = vrot.slane %v504_v61, 7  ;;  %v515_v6 = vsub.f32 %v2022_v49, %v509_v62  ;;  %v531_v13 = vmul.f32 %v2055_v44, %v525_v5  ;;  %v1700_v44 = vld [vmem:[#allocation6 + $0x20] ss:$12 sps:$4 sm:$0xff]  }
 0x199   :  { %v517_v7 = vsub.f32 %v2041_v24, %v511_v63  ;;  %v1693_v24 = vld [vmem:[#allocation6] ss:$12 sps:$4 sm:$0xff]  }
 0x19a   :  { %v516_v8 = vsub.f32 %v2043_v25, %v510_v4  ;;  %v536_v9 = vrot.slane %v515_v6, %v535_v60  ;;  %v1695_v25 = vld [vmem:[#allocation6 + $0x4] ss:$12 sps:$4 sm:$0xff]  }
 0x19b   :  { %v544_v10 = vrot.slane %v517_v7, %v535_v60  ;;  %989 = vmatprep.subr.bf16.mxu0 %v1695_v25  ;;  %v840_v25 = vsub.s32 6, %v2017_v47 }
 0x19c   :  { %v540_v14 = vrot.slane %v516_v8, %v535_v60  ;;  %v545_v16 = vadd.f32 %v536_v9, %v530_v12 }
 0x19d   :  { %v547_v15 = vadd.f32 %v544_v10, %v532_v11 }
 0x19e   :  { %v546_v17 = vadd.f32 %v540_v14, %v531_v13  ;;  %v548_v20 = vpack.c.bf16 %v545_v16, %v545_v16 }
 0x19f   :  { %v550_v18 = vpack.c.bf16 %v547_v15, %v547_v15 }
 0x1a0   :  { %v549_v19 = vpack.c.bf16 %v546_v17, %v546_v17 }
 0x1a1   :  { %1580 = vmatmul.mubr.bf16.vlgmr.msra.gmra.mrb[4].mxu1 %v550_v18 }
 0x1a2   :  { %731 = vmatprep.mubr.bf16.mxu0 %v549_v19  ;;  %1599 = vmatprep.mubr.msk.bf16.mxu1 %vm1906_vm0, %v1904_v0 }
 0x1a3   :  { %732 = vmatmul.mubr.bf16.vlgmr.msra.gmra.mrb[4].mxu0 %v548_v20  ;;  %1584 = vmatpush3.bf16.msra.mxu1 %v1696_v40 }
 0x1a4   :  { %1021 = vmatprep.mubr.bf16.mxu0 %v1905_v1  ;;  %990 = vmatpush1.bf16.msra.mxu0 %v1693_v24  ;;  %v1707_v1 = vld [vmem:[#allocation6 + $0x4c] ss:$12 sps:$4 sm:$0xff]  }
 0x1a5   :  { %1585 = vmatprep.subr.bf16.mxu1 %v1904_v0  ;;  %991 = vmatprep.subr.bf16.mxu0 %v1699_v41 }
 0x1a7   :  { %1586 = vmatpush3.bf16.msra.mxu1 %v1700_v44 }
 0x1a8   :  { %992 = vmatpush1.bf16.msra.mxu0 %v1697_v21  ;;  %1587 = vmatprep.subr.bf16.mxu1 %v1904_v0  ;;  %v845_v21 = vsub.s32 7, %v2017_v47 }
 0x1a9   :  { %993 = vmatprep.subr.bf16.mxu0 %v1703_v22 }
 0x1ab   :  { %1588 = vmatpush3.bf16.msra.mxu1 %v1704_v23 }
 0x1ac   :  { %994 = vmatpush1.bf16.msra.mxu0 %v1701_v26  ;;  %1589 = vmatprep.subr.bf16.mxu1 %v1904_v0 }
 0x1ad   :  { %995 = vmatprep.subr.bf16.mxu0 %v1707_v1 }
 0x1af   :  { %1590 = vmatpush3.bf16.msra.mxu1 %v1708_v27  ;;  %v1725_v27 = vld [vmem:[#allocation7 + $0x80] sm:$0xff]  }
 0x1b0   :  { %996 = vmatpush1.bf16.msra.mxu0 %v1705_v28  ;;  %1591 = vmatprep.subr.bf16.mxu1 %v1904_v0  ;;  %v1727_v28 = vld [vmem:[#allocation7] sm:$0xff]  }
 0x1b1   :  { %997 = vmatprep.subr.bf16.mxu0 %v1711_v29 }
 0x1b3   :  { %1592 = vmatpush3.bf16.msra.mxu1 %v1712_v30  ;;  %v1729_v30 = vld [vmem:[#allocation7 + $0x48] sm:$0xff]  }
 0x1b4   :  { %998 = vmatpush1.bf16.msra.mxu0 %v1709_v31  ;;  %1593 = vmatprep.subr.bf16.mxu1 %v1904_v0  ;;  %v1728_v31 = vld [vmem:[#allocation7 + $0x88] sm:$0xff]  }
 0x1b5   :  { %999 = vmatprep.subr.bf16.mxu0 %v1715_v32  ;;  %v1730_v32 = vld [vmem:[#allocation7 + $0x8] sm:$0xff]  }
 0x1b7   :  { %1594 = vmatpush3.bf16.msra.mxu1 %v1716_v33  ;;  %v1732_v33 = vld [vmem:[#allocation7 + $0x50] sm:$0xff]  }
 0x1b8   :  { %1000 = vmatpush1.bf16.msra.mxu0 %v1713_v34  ;;  %1595 = vmatprep.subr.bf16.mxu1 %v1904_v0  ;;  %v1733_v34 = vld [vmem:[#allocation7 + $0x10] sm:$0xff]  }
 0x1b9   :  { %1001 = vmatprep.subr.bf16.mxu0 %v1719_v35  ;;  %v1735_v35 = vld [vmem:[#allocation7 + $0x58] sm:$0xff]  }
 0x1bb   :  { %1596 = vmatpush3.bf16.msra.mxu1 %v1720_v36  ;;  %v1734_v36 = vld [vmem:[#allocation7 + $0x98] sm:$0xff]  }
 0x1bc   :  { %1002 = vmatpush1.bf16.msra.mxu0 %v1717_v37  ;;  %1597 = vmatprep.subr.bf16.mxu1 %v1904_v0  ;;  %v1736_v37 = vld [vmem:[#allocation7 + $0x18] sm:$0xff]  }
 0x1bd   :  { %1003 = vmatprep.subr.bf16.mxu0 %v1723_v38  ;;  %v1737_v38 = vld [vmem:[#allocation7 + $0xa0] sm:$0xff]  }
 0x1bf   :  { %1598 = vmatpush3.bf16.msra.mxu1 %v1724_v39  ;;  %v1738_v39 = vld [vmem:[#allocation7 + $0x60] sm:$0xff]  }
 0x1c0   :  { %1004 = vmatpush1.bf16.msra.mxu0 %v1721_v42  ;;  %1603 = vmatprep.subr.bf16.mxu1 %v1904_v0  ;;  %v1739_v42 = vld [vmem:[#allocation7 + $0x20] sm:$0xff]  }
 0x1c1   :  { %1512 = vmatprep.subr.bf16.mxu0 %v1726_v43  ;;  %v1740_v43 = vld [vmem:[#allocation7 + $0xa8] sm:$0xff]  }
 0x274   :  { %v773_v46 = vpop.f32.mrb[4].mxu1 }
 0x275   :  { %v1581_v50 = vpop.f32.mrb[5].mxu1 }
 0x276   :  { %v1488_v51 = vpop.f32.mrb[4].mxu0  ;;  %v776_v52 = vpop.f32.mrb[6].mxu1  ;;  %v1743_v50 = vld [vmem:[#allocation7 + $0xb0] sm:$0xff]  }
 0x277   :  { %v1489_v54 = vpop.f32.mrb[5].mxu0  ;;  %v1582_v56 = vpop.f32.mrb[7].mxu1  ;;  %v1745_v52 = vld [vmem:[#allocation7 + $0x30] sm:$0xff]  }
 0x278   :  { %v1490_v57 = vadd.f32 %v1489_v54, %v1488_v51  ;;  %v1491_v58 = vpop.f32.mrb[6].mxu0  ;;  %v1744_v51 = vld [vmem:[#allocation7 + $0x70] sm:$0xff]   ;;  %v1747_v54 = vld [vmem:[#allocation7 + $0x78] sm:$0xff]  }
 0x279   :  { %v1492_v59 = vpop.f32.mrb[7].mxu0  ;;  %v1748_v56 = vld [vmem:[#allocation7 + $0x38] sm:$0xff]   ;;  %v98_v58 = vld [vmem:[#allocation9 + $0x28] sm:$0xff] }
 0x27a   :  { %v734_v60 = vadd.f32 %v1490_v57, %v554_v53  ;;  %v1746_v53 = vld [vmem:[#allocation7 + $0xb8] sm:$0xff]   ;;  %v97_v59 = vld [vmem:[#allocation9 + $0x20] sm:$0xff] }
 0x27b   :  { %v96_v57 = vld [vmem:[#allocation9 + $0x18] sm:$0xff] }
 0x27c   :  { %v774_v61 = vadd.f32 %v773_v46, %v734_v60  ;;  %v1742_v46 = vld [vmem:[#allocation7 + $0x28] sm:$0xff]   ;;  %v852_v60 = vrot.slane %v96_v57, %v2020_v48 }
 0x27e   :  { %1763 = vtanh.f32 %v774_v61  ;;  %v860_v61 = vrot.slane %v98_v58, %v2020_v48 }
 0x288   :  { %v1764_v62 = vpop.eup %1763 }
 0x289   :  { %v812_v63 = vrot.slane %v1764_v62, 4  ;;  %v819_v2 = vmul.f32 %v1764_v62, %v1764_v62 }
 0x28b   :  { %v813_v3 = vadd.f32 %v1764_v62, %v812_v63  ;;  %v820_v4 = vrot.slane %v819_v2, 4 }
 0x28d   :  { %v814_v5 = vrot.slane %v813_v3, 2  ;;  %v821_v6 = vadd.f32 %v820_v4, %v819_v2 }
 0x28f   :  { %v815_v7 = vadd.f32 %v814_v5, %v813_v3  ;;  %v822_v8 = vrot.slane %v821_v6, 2 }
 0x291   :  { %v816_v9 = vrot.slane %v815_v7, 1  ;;  %v823_v10 = vadd.f32 %v822_v8, %v821_v6 }
 0x293   :  { %v817_v11 = vadd.f32 %v816_v9, %v815_v7  ;;  %v824_v12 = vrot.slane %v823_v10, 1 }
 0x295   :  { %v818_v13 = vmul.f32 0.125, %v817_v11  ;;  %v825_v14 = vadd.f32 %v824_v12, %v823_v10 }
 0x297   :  { %v826_v15 = vmul.f32 0.125, %v825_v14  ;;  %v827_v16 = vmul.f32 %v818_v13, %v818_v13 }
 0x299   :  { %v828_v17 = vsub.f32 %v826_v15, %v827_v16 }
 0x29b   :  { %v829_v18 = vmax.f32 %v828_v17, 0.0 }
 0x29d   :  { %v830_v19 = vadd.f32 1e-05, %v829_v18 }
 0x29f   :  { %1765 = vrsqrt.f32 %v830_v19 }
 0x2a9   :  { %v1766_v20 = vpop.eup %1765 }
 0x2aa   :  { %v832_v24 = vmul.f32 %v1766_v20, %v2022_v49  ;;  %v1127_v20 = vrot.slane %v96_v57, %v164_v55 }
 0x2ac   :  { %v833_v40 = vmul.f32 %v832_v24, %v818_v13  ;;  %v841_v44 = vrot.slane %v832_v24, %v840_v25 }
 0x2ae   :  { %v835_v41 = vrot.slane %v833_v40, 7  ;;  %v842_v23 = vmul.f32 %v1764_v62, %v841_v44  ;;  %v856_v62 = vrot.slane %v97_v59, %v2020_v48 }
 0x2b0   :  { %v837_v22 = vsub.f32 %v2022_v49, %v835_v41  ;;  %v1731_v49 = vld [vmem:[#allocation7 + $0x90] sm:$0xff]  }
 0x2b2   :  { %v846_v26 = vrot.slane %v837_v22, %v845_v21 }
 0x2b4   :  { %v847_v1 = vadd.f32 %v846_v26, %v842_v23 }
 0x2b6   :  { %v848_v29 = vpack.c.bf16 %v847_v1, %v847_v1 }
 0x2b8   :  { %1022 = vmatmul.mubr.bf16.vlgmr.msra.gmra.mrb[8].mxu0 %v848_v29  ;;  %1600 = vmatmul.mubr.bf16.vlgmr.msra.gmra.mrb[8].mxu1 %v848_v29 }
 0x2b9   :  { %1604 = vmatpush3.bf16.msra.mxu1 %v1725_v27  ;;  %1513 = vmatpush3.bf16.msra.mxu0 %v1727_v28 }
 0x2ba   :  { %1605 = vmatprep.subr.bf16.mxu1 %v1904_v0  ;;  %1514 = vmatprep.subr.bf16.mxu0 %v1729_v30 }
 0x2bb   :  { %1619 = vmatprep.mubr.msk.bf16.mxu1 %vm1906_vm0, %v1904_v0 }
 0x2bd   :  { %1606 = vmatpush3.bf16.msra.mxu1 %v1728_v31  ;;  %1515 = vmatpush3.bf16.msra.mxu0 %v1730_v32 }
 0x2be   :  { %1607 = vmatprep.subr.bf16.mxu1 %v1904_v0  ;;  %1516 = vmatprep.subr.bf16.mxu0 %v1732_v33 }
 0x2c1   :  { %1608 = vmatpush3.bf16.msra.mxu1 %v1731_v49  ;;  %1517 = vmatpush3.bf16.msra.mxu0 %v1733_v34 }
 0x2c2   :  { %1609 = vmatprep.subr.bf16.mxu1 %v1904_v0  ;;  %1518 = vmatprep.subr.bf16.mxu0 %v1735_v35 }
 0x2c5   :  { %1610 = vmatpush3.bf16.msra.mxu1 %v1734_v36  ;;  %1519 = vmatpush3.bf16.msra.mxu0 %v1736_v37 }
 0x2c6   :  { %1611 = vmatprep.subr.bf16.mxu1 %v1904_v0  ;;  %1520 = vmatprep.subr.bf16.mxu0 %v1738_v39 }
 0x2c9   :  { %1612 = vmatpush3.bf16.msra.mxu1 %v1737_v38  ;;  %1521 = vmatpush3.bf16.msra.mxu0 %v1739_v42 }
 0x2ca   :  { %1613 = vmatprep.subr.bf16.mxu1 %v1904_v0  ;;  %1522 = vmatprep.subr.bf16.mxu0 %v1741_v45 }
 0x2cd   :  { %1614 = vmatpush3.bf16.msra.mxu1 %v1740_v43  ;;  %1523 = vmatpush3.bf16.msra.mxu0 %v1742_v46 }
 0x2ce   :  { %1615 = vmatprep.subr.bf16.mxu1 %v1904_v0  ;;  %1524 = vmatprep.subr.bf16.mxu0 %v1744_v51 }
 0x2d1   :  { %1616 = vmatpush3.bf16.msra.mxu1 %v1743_v50  ;;  %1525 = vmatpush3.bf16.msra.mxu0 %v1745_v52 }
 0x2d2   :  { %1617 = vmatprep.subr.bf16.mxu1 %v1904_v0  ;;  %1526 = vmatprep.subr.bf16.mxu0 %v1747_v54 }
 0x2d5   :  { %1618 = vmatpush3.bf16.msra.mxu1 %v1746_v53  ;;  %1527 = vmatpush3.bf16.msra.mxu0 %v1748_v56 }
 0x38b   :  { %v1023_v63 = vpop.f32.mrb[8].mxu0  ;;  %v1064_v2 = vpop.f32.mrb[8].mxu1 }
 0x38c   :  { %v1024_v3 = vadd.f32 %v1023_v63, %v852_v60  ;;  %v1065_v0 = vadd.f32 %v1064_v2, %v860_v61  ;;  %v1025_v4 = vpop.f32.mrb[9].mxu0  ;;  %v1601_v5 = vpop.f32.mrb[9].mxu1 }
 0x38d   :  { %v1026_v6 = vadd.f32 %v1025_v4, %v856_v62  ;;  %v1027_v7 = vpop.f32.mrb[10].mxu0  ;;  %v1067_v8 = vpop.f32.mrb[10].mxu1 }
 0x38e   :  { %1767 = vtanh.f32 %v1024_v3  ;;  %v1028_v9 = vpop.f32.mrb[11].mxu0  ;;  %v1602_v10 = vpop.f32.mrb[11].mxu1 }
 0x38f   :  { %1769 = vtanh.f32 %v1065_v0 }
 0x390   :  { %1771 = vtanh.f32 %v1026_v6 }
 0x398   :  { %v1768_v11 = vpop.eup %1767 }
 0x399   :  { %v1770_v12 = vpop.eup %1769  ;;  %v1073_v48 = vpack.c.bf16 %v1768_v11, %v1768_v11 }
 0x39a   :  { %v1772_v13 = vpop.eup %1771  ;;  %v1075_v14 = vpack.c.bf16 %v1770_v12, %v1770_v12 }
 0x39b   :  { %v1074_v15 = vpack.c.bf16 %v1772_v13, %v1772_v13 }
 0x39c   :  { %1620 = vmatmul.mubr.bf16.vlgmr.msra.gmra.mrb[12].mxu1 %v1075_v14 }
 0x39d   :  { %1304 = vmatprep.mubr.bf16.mxu0 %v1074_v15 }
 0x39e   :  { %1305 = vmatmul.mubr.bf16.vlgmr.msra.gmra.mrb[12].mxu0 %v1073_v48 }
 0x46f   :  { %v1346_v16 = vpop.f32.mrb[12].mxu1 }
 0x470   :  { %v1621_v17 = vpop.f32.mrb[13].mxu1 }
 0x471   :  { %v1528_v18 = vpop.f32.mrb[12].mxu0  ;;  %v1349_v19 = vpop.f32.mrb[14].mxu1 }
 0x472   :  { %v1529_v24 = vpop.f32.mrb[13].mxu0  ;;  %v1622_v25 = vpop.f32.mrb[15].mxu1 }
 0x473   :  { %v1530_v40 = vadd.f32 %v1529_v24, %v1528_v18  ;;  %v1531_v41 = vpop.f32.mrb[14].mxu0 }
 0x474   :  { %v1532_v44 = vpop.f32.mrb[15].mxu0 }
 0x475   :  { %v1307_v21 = vadd.f32 %v1530_v40, %v1127_v20 }
 0x477   :  { %v1347_v22 = vadd.f32 %v1346_v16, %v1307_v21 }
 0x479   :  { %v1462_v23 = vmul.f32 -1.442695, %v1347_v22 }
 0x47b   :  { %1773 = vpow2.f32 %v1462_v23 }
 0x485   :  { %v1774_v26 = vpop.eup %1773 }
 0x486   :  { %v1355_v1 = vadd.f32 1.0, %v1774_v26 }
 0x488   :  { %1775 = vrcp.f32 %v1355_v1 }
 0x492   :  { %v1776_v27 = vpop.eup %1775 }
 0x493   :  { %1358 = vst [vmem:[%s2117_s6] sm:$0xff] %v1776_v27 }
 0x494   :  { %1363 = vsyncpa [#allocation3], 1 }
 0x495   :  { %1364 = vsyncpa [#allocation5], 1 }
 0x496   :  { %1365 = vsyncpa [#allocation8], 1 }

</bundles_post_ra>
